<compile_context>
chip_gen: v7x
topology: tpu7x:2x2x1
jax: 0.10.0
libtpu: 0.0.40
codegen_flags: <defaults>
</compile_context>

<pallas_src>
import jax
import jax.numpy as jnp
from jax.experimental import pallas as pl
from jax.experimental.pallas import tpu as pltpu

EPS = 1e-5  # nn.InstanceNorm2d default


def _instance_norm_kernel(x_ref, o_ref):
    # x_ref block: (TM, H*W) -- TM independent instances, full spatial plane each.
    x = x_ref[...].astype(jnp.float32)
    inv_n = 1.0 / x.shape[-1]
    mean = jnp.sum(x, axis=-1, keepdims=True) * inv_n            # (TM, 1)
    xc = x - mean                                                # centered, reused
    var = jnp.sum(xc * xc, axis=-1, keepdims=True) * inv_n       # biased variance
    inv = jax.lax.rsqrt(var + EPS)
    o_ref[...] = (xc * inv).astype(o_ref.dtype)


def _choose_tm(num_rows, row_elems, itemsize):
    """Rows per block: ~1 MiB input tile, multiple of 8 (f32 sublane tiling),
    or the full extent when the whole problem fits in one block."""
    row_bytes = row_elems * itemsize
    target_bytes = 1 << 20  # ~1 MiB/block -> <=4 MiB VMEM double-buffered in+out
    tm = max(1, target_bytes // row_bytes)
    if tm >= num_rows:
        return num_rows  # full-extent block: no divisibility constraint
    return max(8, (tm // 8) * 8)


def instance_norm2d(x):
    """InstanceNorm2d(affine=False) over an NCHW tensor via a Pallas TPU kernel."""
    N, C, H, W = x.shape
    rows, hw = N * C, H * W
    x2 = x.reshape(rows, hw)  # lane-dense layout

    tm = _choose_tm(rows, hw, jnp.dtype(x.dtype).itemsize)
    grid = (pl.cdiv(rows, tm),)

    out2 = pl.pallas_call(
        _instance_norm_kernel,
        out_shape=jax.ShapeDtypeStruct((rows, hw), x.dtype),
        grid=grid,
        in_specs=[pl.BlockSpec((tm, hw), lambda i: (i, 0))],
        out_specs=pl.BlockSpec((tm, hw), lambda i: (i, 0)),
        compiler_params=pltpu.CompilerParams(
            dimension_semantics=("parallel",),
        ),
    )(x2)

    return out2.reshape(N, C, H, W)


class MyModel:
    """JAX/Pallas equivalent of the PyTorch MyModel (InstanceNorm2d(3).eval())."""

    def __call__(self, x):
        return [instance_norm2d(x)]


if __name__ == "__main__":
    key = jax.random.PRNGKey(0)
    # InstanceNorm2d(3) => 3 channels; small deterministic input.
    x = jax.random.normal(key, (2, 3, 16, 16), dtype=jnp.float32)

    model = MyModel()
    (y,) = model(x)
    y = jax.block_until_ready(y)

    # sanity check vs. pure-JAX reference
    mean = jnp.mean(x, axis=(2, 3), keepdims=True)
    var = jnp.mean((x - mean) ** 2, axis=(2, 3), keepdims=True)
    y_ref = (x - mean) / jnp.sqrt(var + EPS)
    assert y.shape == x.shape and y.dtype == x.dtype
    assert jnp.max(jnp.abs(y - y_ref)) < 1e-4

    print("KERNEL_OK")
</pallas_src>

<mosaic_0001>
module attributes {stable_mosaic.version = 11 : i64} {
  func.func @_instance_norm_kernel(%arg0: i32, %arg1: memref<6x256xf32, #tpu.memory_space<vmem>>, %arg2: memref<6x256xf32, #tpu.memory_space<vmem>>) attributes {dimension_semantics = [#tpu.dimension_semantics<parallel>], iteration_bounds = array<i64: 1>, scalar_prefetch = 0 : i64, scratch_operands = 0 : i64, tpu.core_type = #tpu.core_type<tc>, window_params = [{transform_indices = @transform_0, window_bounds = array<i64: 6, 256>}, {transform_indices = @transform_1, window_bounds = array<i64: 6, 256>}]} {
    %c0 = arith.constant 0 : index
    %c0_0 = arith.constant 0 : index
    %0 = vector.load %arg1[%c0, %c0_0] : memref<6x256xf32, #tpu.memory_space<vmem>>, vector<6x256xf32>
    %cst = arith.constant dense<0.000000e+00> : vector<6xf32>
    %1 = vector.multi_reduction <add>, %0, %cst [1] : vector<6x256xf32> to vector<6xf32>
    %2 = vector.shape_cast %1 : vector<6xf32> to vector<6x1xf32>
    %cst_1 = arith.constant 3.906250e-03 : f32
    %3 = vector.broadcast %cst_1 : f32 to vector<6x1xf32>
    %4 = arith.mulf %2, %3 : vector<6x1xf32>
    %5 = vector.broadcast %4 : vector<6x1xf32> to vector<6x256xf32>
    %6 = arith.subf %0, %5 : vector<6x256xf32>
    %7 = arith.mulf %6, %6 : vector<6x256xf32>
    %cst_2 = arith.constant dense<0.000000e+00> : vector<6xf32>
    %8 = vector.multi_reduction <add>, %7, %cst_2 [1] : vector<6x256xf32> to vector<6xf32>
    %9 = vector.shape_cast %8 : vector<6xf32> to vector<6x1xf32>
    %cst_3 = arith.constant 3.906250e-03 : f32
    %10 = vector.broadcast %cst_3 : f32 to vector<6x1xf32>
    %11 = arith.mulf %9, %10 : vector<6x1xf32>
    %cst_4 = arith.constant 9.99999974E-6 : f32
    %12 = vector.broadcast %cst_4 : f32 to vector<6x1xf32>
    %13 = arith.addf %11, %12 : vector<6x1xf32>
    %14 = math.rsqrt %13 : vector<6x1xf32>
    %15 = vector.broadcast %14 : vector<6x1xf32> to vector<6x256xf32>
    %16 = arith.mulf %6, %15 : vector<6x256xf32>
    %c0_5 = arith.constant 0 : index
    %c0_6 = arith.constant 0 : index
    %17 = vector.load %arg2[%c0_5, %c0_6] : memref<6x256xf32, #tpu.memory_space<vmem>>, vector<6x256xf32>
    tpu.vector_store %arg2[%c0_5, %c0_6], %16 {strides = array<i32>} : memref<6x256xf32, #tpu.memory_space<vmem>>, vector<6x256xf32>,
    return
  }
  func.func @transform_0(%arg0: i32) -> (i32, i32) {
    %c0_i32 = arith.constant 0 : i32
    %c0_i32_0 = arith.constant 0 : i32
    return %arg0, %c0_i32 : i32, i32
  }
  func.func @transform_1(%arg0: i32) -> (i32, i32) {
    %c0_i32 = arith.constant 0 : i32
    %c0_i32_0 = arith.constant 0 : i32
    return %arg0, %c0_i32 : i32, i32
  }
}

</mosaic_0001>

<bundles_post_ra>
// kernel: tpu_custom_call.1
= control target key start
LH: loop header
LB: loop body
LE: loop exit
PB: predicated region body
PF: predicated region fallthrough
CT: control target
= control target key end

     0   :  { %6 = vsyncpa [#allocation3], 0  ;;  %s149_s0 = inlined_call_operand.hbm [shape: f32[6,256], index: 0, kind: input, shape index: {}]   ;;  %s150_s1 = inlined_call_operand.hbm [shape: f32[6,256], index: 1, kind: output, shape index: {}]  }
   0x1   :  { %7 = vsyncpa [#allocation4], 0  ;;  %s113_s6 = smov [#allocation2]   ;;  %s65_s10 = scalar_lea.hbm %s149_s0, 256 }
   0x2   :  { %s14_s7 = sshll.u32 %s113_s6, 4  ;;  %p66_p0 = scmp.ne.s32.totalorder %s149_s0, %s65_s10  ;;  %s15_s7 = int_to_ptr.vmem [resolvable:$true] %s14_s7 }
   0x3   :  { %p69_p1 = scmp.lt.u32.totalorder %s65_s10, %s149_s0 }
   0x5   :  { %p71_p2 = pnand %p69_p1, %p66_p0 }
   0x7   :  { %74 = shalt.err (!%p71_p2)
}
   0x8   :  { %s75_s15 = scalar_lea.vmem %s15_s7, 256  ;;  %p80_p4 = scmp.lt.s32.totalorder %s15_s7, %s15_s7 }
   0x9   :  { %p76_p3 = scmp.ne.s32.totalorder %s15_s7, %s75_s15  ;;  %p81_p5 = scmp.lt.s32.totalorder %s75_s15, %s75_s15 }
   0xb   :  { %p82_p6 = por %p81_p5, %p80_p4 }
   0xd   :  { %p83_p7 = pnand %p82_p6, %p76_p3 }
   0xf   :  { %86 = shalt.err (!%p83_p7)
}
  0x10   :  { %17 = dma.hbm_to_vmem [thread:$0]  %s149_s0, 256, %s15_s7, [#allocation3]  }
  0x11   :  { %109 = dma.done.wait [#allocation3], 256  }
  0x12   :  { %110 = vsyncadd [#allocation3], 4294967040  ;;  %vm23_vm0 = vcmask 1045504   ;;  %v21_v0 = vld [vmem:[#allocation2] sm:$0x3f]  ;;  %s114_s0 = smov [#allocation5]  }
  0x13   :  { %v22_v1 = vld [vmem:[#allocation2 + $0x8] sm:$0x3f]  ;;  %v24_v2 = vsel %vm23_vm0, %v21_v0, 0.0  ;;  %s52_s18 = sshll.u32 %s114_s0, 4  ;;  %s53_s18 = int_to_ptr.vmem [resolvable:$true] %s52_s18 }
  0x14   :  { %v25_v3 = vsel %vm23_vm0, %v22_v1, 0.0  ;;  %s87_s19 = scalar_lea.vmem %s53_s18, 256  ;;  %p92_p9 = scmp.lt.s32.totalorder %s53_s18, %s53_s18 }
  0x15   :  { %v26_v4 = vadd.f32 %v25_v3, %v24_v2  ;;  %p88_p8 = scmp.ne.s32.totalorder %s53_s18, %s87_s19  ;;  %p93_p10 = scmp.lt.s32.totalorder %s87_s19, %s87_s19 }
  0x17   :  { %27 = vadd.xlane.f32.xlu0 %v26_v4  ;;  %p94_p11 = por %p93_p10, %p92_p9 }
  0x19   :  { %p95_p12 = pnand %p94_p11, %p88_p8 }
  0xa4   :  { %v28_v5 = vpop.xlane.xlu0 %27 }
  0xa5   :  { %v29_v6 = vmul.f32 0.00390625, %v28_v5 }
  0xa7   :  { %v30_v7 = vsub.f32 %v21_v0, %v29_v6  ;;  %v31_v8 = vsub.f32 %v22_v1, %v29_v6 }
  0xa9   :  { %v32_v9 = vmul.f32 %v30_v7, %v30_v7  ;;  %v33_v10 = vmul.f32 %v31_v8, %v31_v8 }
  0xab   :  { %v34_v11 = vsel %vm23_vm0, %v32_v9, 0.0  ;;  %v35_v12 = vsel %vm23_vm0, %v33_v10, 0.0 }
  0xac   :  { %v36_v13 = vadd.f32 %v35_v12, %v34_v11 }
  0xae   :  { %37 = vadd.xlane.f32.xlu0 %v36_v13 }
 0x13b   :  { %v38_v14 = vpop.xlane.xlu0 %37 }
 0x13c   :  { %v39_v15 = vmul.f32 0.00390625, %v38_v14 }
 0x13e   :  { %v40_v16 = vadd.f32 1e-05, %v39_v15 }
 0x140   :  { %63 = vrsqrt.f32 %v40_v16 }
 0x14a   :  { %v64_v17 = vpop.eup %63 }
 0x14b   :  { %v42_v18 = vmul.f32 %v64_v17, %v30_v7  ;;  %v43_v19 = vmul.f32 %v64_v17, %v31_v8 }
 0x14d   :  { %44 = vst [vmem:[#allocation5] sm:$0x3f] %v42_v18  ;;  %45 = vst [vmem:[#allocation5 + $0x8] sm:$0x3f] %v43_v19 }
 0x14e   :  { %98 = shalt.err (!%p95_p12)
}
 0x14f   :  { %s99_s22 = scalar_lea.hbm %s150_s1, 256 }
 0x150   :  { %p100_p13 = scmp.ne.s32.totalorder %s150_s1, %s99_s22  ;;  %p103_p0 = scmp.lt.u32.totalorder %s99_s22, %s150_s1 }
 0x152   :  { %p105_p1 = pnand %p103_p0, %p100_p13 }
 0x154   :  { %108 = shalt.err (!%p105_p1)
}
 0x155   :  { %55 = dma.vmem_to_hbm [thread:$0]  %s53_s18, 256, %s150_s1, [#allocation4]  }
 0x156   :  { %111 = dma.done.wait [#allocation4], 256  }
 0x157   :  { %112 = vsyncadd [#allocation4], 4294967040 }
 0x158   :  { %59 = vsyncpa [#allocation3], 1 }
 0x159   :  { %60 = vsyncpa [#allocation4], 1 }

</bundles_post_ra>
